<compile_context>
chip_gen: v6e
topology: v6e:2x2x1
jax: 0.10.0
libtpu: 0.0.40
codegen_flags: <defaults>
</compile_context>

<pallas_src>
import math

import jax
import jax.numpy as jnp
from jax.experimental import pallas as pl
from jax.experimental.pallas import tpu as pltpu

TM_MAX = 2048          # batch tile upper bound (2 MiB double-buffered x tile in f32)
TINY_BATCH = 256       # below this, use the single-call / no-grid path


def _round_up(x, m):
    return (x + m - 1) // m * m


def classifier_kernel(x_ref, w1_ref, b1_ref, w2_ref, b2_ref, o_ref):
    # fc1: [TM,128] @ [128,64] on the MXU, f32 accumulate
    h = jnp.dot(x_ref[...], w1_ref[...], preferred_element_type=jnp.float32)
    h = h + b1_ref[...]
    # LeakyReLU (PyTorch default negative_slope = 0.01)
    h = jnp.where(h > 0, h, 0.01 * h)
    # fc2: [TM,64] @ [64,numclass]
    out = jnp.dot(h, w2_ref[...], preferred_element_type=jnp.float32)
    out = out + b2_ref[...]
    o_ref[...] = out.astype(o_ref.dtype)


def classifier_forward(x, w1, b1, w2, b2, *, tm_max=TM_MAX):
    """x: [B,128] f32. w1: [128,64] f32, b1: [1,64] f32, w2: [64,C] f32, b2: [1,C] f32."""
    B, D = x.shape
    H = w1.shape[1]
    C = w2.shape[1]

    if B <= TINY_BATCH:
        # Tiny-batch path: one kernel invocation, whole-array VMEM refs, no grid,
        # no wrapper padding/slicing.
        vmem = pl.BlockSpec(memory_space=pltpu.MemorySpace.VMEM)
        return pl.pallas_call(
            classifier_kernel,
            out_shape=jax.ShapeDtypeStruct((B, C), x.dtype),
            in_specs=[vmem, vmem, vmem, vmem, vmem],
            out_specs=vmem,
        )(x, w1, b1, w2, b2)

    # Large-batch path: tile only the batch axis.  Cap tm at ~ceil(B/2) so the grid
    # has at least 2 steps (lets v7x shard the batch across both TensorCores).
    tm = min(tm_max, _round_up(pl.cdiv(B, 2), 8))
    grid = (pl.cdiv(B, tm),)  # ragged last block: OOB rows masked on the output write

    return pl.pallas_call(
        classifier_kernel,
        out_shape=jax.ShapeDtypeStruct((B, C), x.dtype),
        grid=grid,
        in_specs=[
            pl.BlockSpec((tm, D), lambda i: (i, 0)),
            # Weights/biases: constant index_map -> VMEM-resident across grid steps.
            pl.BlockSpec((D, H), lambda i: (0, 0)),
            pl.BlockSpec((1, H), lambda i: (0, 0)),
            pl.BlockSpec((H, C), lambda i: (0, 0)),
            pl.BlockSpec((1, C), lambda i: (0, 0)),
        ],
        out_specs=pl.BlockSpec((tm, C), lambda i: (i, 0)),
        compiler_params=pltpu.CompilerParams(
            dimension_semantics=("parallel",)),  # v7x: shard batch over both TCs
    )(x, w1, b1, w2, b2)


def init_params(key, numclass=10):
    """Mirror weights_init_kaiming on nn.Linear: kaiming_normal_(fan_in, a=0) =>
    std = sqrt(2/fan_in).  Biases keep the PyTorch Linear default
    U(-1/sqrt(fan_in), 1/sqrt(fan_in)).  Weights are stored [in, out] (transposed
    vs PyTorch) and kept in f32 (weight HBM traffic is negligible here)."""
    k1, k2, k3, k4 = jax.random.split(key, 4)
    fan1, out1 = 128, 64
    fan2, out2 = 64, numclass
    w1 = jax.random.normal(k1, (fan1, out1), jnp.float32) * math.sqrt(2.0 / fan1)
    b1 = jax.random.uniform(k2, (1, out1), jnp.float32,
                            -1.0 / math.sqrt(fan1), 1.0 / math.sqrt(fan1))
    w2 = jax.random.normal(k3, (fan2, out2), jnp.float32) * math.sqrt(2.0 / fan2)
    b2 = jax.random.uniform(k4, (1, out2), jnp.float32,
                            -1.0 / math.sqrt(fan2), 1.0 / math.sqrt(fan2))
    return w1, b1, w2, b2


def reference_forward(x, w1, b1, w2, b2):
    h = x @ w1 + b1
    h = jnp.where(h > 0, h, 0.01 * h)
    return h @ w2 + b2


if __name__ == "__main__":
    key = jax.random.PRNGKey(0)
    kx, kp = jax.random.split(key)
    numclass = 10
    w1, b1, w2, b2 = init_params(kp, numclass=numclass)

    # Small batch: exercises the no-grid, whole-array-VMEM path.
    x_small = jax.random.normal(kx, (8, 128), jnp.float32)
    out_small = jax.block_until_ready(classifier_forward(x_small, w1, b1, w2, b2))
    ref_small = reference_forward(x_small, w1, b1, w2, b2)
    assert out_small.shape == (8, numclass)
    assert jnp.allclose(out_small, ref_small, atol=1e-2, rtol=1e-2)

    # Larger batch: exercises the batch-tiled grid path (2 grid steps, ragged last
    # block — B=600 with tm=304 leaves 8 out-of-bounds rows that must be masked).
    x_big = jax.random.normal(kx, (600, 128), jnp.float32)
    out_big = jax.block_until_ready(classifier_forward(x_big, w1, b1, w2, b2))
    ref_big = reference_forward(x_big, w1, b1, w2, b2)
    assert out_big.shape == (600, numclass)
    assert jnp.allclose(out_big, ref_big, atol=1e-2, rtol=1e-2)

    print("KERNEL_OK")
</pallas_src>

<mosaic_0001>
module attributes {stable_mosaic.version = 11 : i64} {
  func.func @classifier_kernel(%arg0: memref<8x128xf32, #tpu.memory_space<vmem>>, %arg1: memref<128x64xf32, #tpu.memory_space<vmem>>, %arg2: memref<1x64xf32, #tpu.memory_space<vmem>>, %arg3: memref<64x10xf32, #tpu.memory_space<vmem>>, %arg4: memref<1x10xf32, #tpu.memory_space<vmem>>, %arg5: memref<8x10xf32, #tpu.memory_space<vmem>>) attributes {dimension_semantics = [], scalar_prefetch = 0 : i64, scratch_operands = 0 : i64, tpu.core_type = #tpu.core_type<tc>} {
    %c0 = arith.constant 0 : index
    %c0_0 = arith.constant 0 : index
    %0 = vector.load %arg0[%c0, %c0_0] : memref<8x128xf32, #tpu.memory_space<vmem>>, vector<8x128xf32>
    %c0_1 = arith.constant 0 : index
    %c0_2 = arith.constant 0 : index
    %1 = vector.load %arg1[%c0_1, %c0_2] : memref<128x64xf32, #tpu.memory_space<vmem>>, vector<128x64xf32>
    %cst = arith.constant dense<0.000000e+00> : vector<8x64xf32>
    %2 = tpu.matmul %0, %1, %cst {dimension_numbers = #tpu.dot_dimension_numbers<[1], [0], [0], [1], [0, 0, 1, 1], [], []>} : vector<8x128xf32>, vector<128x64xf32>, vector<8x64xf32> -> vector<8x64xf32>
    %c0_3 = arith.constant 0 : index
    %c0_4 = arith.constant 0 : index
    %3 = vector.load %arg2[%c0_3, %c0_4] : memref<1x64xf32, #tpu.memory_space<vmem>>, vector<1x64xf32>
    %4 = vector.broadcast %3 : vector<1x64xf32> to vector<8x64xf32>
    %5 = arith.addf %2, %4 : vector<8x64xf32>
    %cst_5 = arith.constant 0.000000e+00 : f32
    %6 = vector.broadcast %cst_5 : f32 to vector<8x64xf32>
    %7 = arith.cmpf ogt, %5, %6 : vector<8x64xf32>
    %cst_6 = arith.constant 0.00999999977 : f32
    %8 = vector.broadcast %cst_6 : f32 to vector<8x64xf32>
    %9 = arith.mulf %8, %5 : vector<8x64xf32>
    %10 = arith.select %7, %5, %9 : vector<8x64xi1>, vector<8x64xf32>
    %c0_7 = arith.constant 0 : index
    %c0_8 = arith.constant 0 : index
    %11 = vector.load %arg3[%c0_7, %c0_8] : memref<64x10xf32, #tpu.memory_space<vmem>>, vector<64x10xf32>
    %cst_9 = arith.constant dense<0.000000e+00> : vector<8x10xf32>
    %12 = tpu.matmul %10, %11, %cst_9 {dimension_numbers = #tpu.dot_dimension_numbers<[1], [0], [0], [1], [0, 0, 1, 1], [], []>} : vector<8x64xf32>, vector<64x10xf32>, vector<8x10xf32> -> vector<8x10xf32>
    %c0_10 = arith.constant 0 : index
    %c0_11 = arith.constant 0 : index
    %13 = vector.load %arg4[%c0_10, %c0_11] : memref<1x10xf32, #tpu.memory_space<vmem>>, vector<1x10xf32>
    %14 = vector.broadcast %13 : vector<1x10xf32> to vector<8x10xf32>
    %15 = arith.addf %12, %14 : vector<8x10xf32>
    %c0_12 = arith.constant 0 : index
    %c0_13 = arith.constant 0 : index
    %16 = vector.load %arg5[%c0_12, %c0_13] : memref<8x10xf32, #tpu.memory_space<vmem>>, vector<8x10xf32>
    tpu.vector_store %arg5[%c0_12, %c0_13], %15 {strides = array<i32>} : memref<8x10xf32, #tpu.memory_space<vmem>>, vector<8x10xf32>,
    return
  }
}

</mosaic_0001>

<bundles_post_ra>
// kernel: tpu_custom_call.1
= control target key start
LH: loop header
LB: loop body
LE: loop exit
PB: predicated region body
PF: predicated region fallthrough
CT: control target
= control target key end

     0   :  { %v331_v1 = vmov 0.0   ;;  %vm332_vm0 = vmmov 0   ;;  %s474_s0 = inlined_call_operand.vmem [shape: f32[8,128], index: 0, kind: input, shape index: {}]   ;;  %s475_s1 = inlined_call_operand.vmem [shape: f32[128,64], index: 1, kind: input, shape index: {}]   ;;  %s476_s2 = inlined_call_operand.vmem [shape: f32[1,64], index: 2, kind: input, shape index: {}]   ;;  %s477_s3 = inlined_call_operand.vmem [shape: f32[64,10], index: 3, kind: input, shape index: {}]   ;;  %s478_s4 = inlined_call_operand.vmem [shape: f32[1,10], index: 4, kind: input, shape index: {}]   ;;  %s479_s5 = inlined_call_operand.hbm [shape: f32[8,10], index: 5, kind: output, shape index: {}]  }
   0x1   :  { %v37_v0 = vld [vmem:[%s475_s1 + $0x78] sm:$0xff]  ;;  %252 = vmatprep.subr.mxu0 %v331_v1  ;;  %v36_v2 = vld [vmem:[%s475_s1 + $0x70] sm:$0xff]  ;;  %284 = vmatprep.mubr.msk.f32.mxu0 %vm332_vm0, %v331_v1  ;;  %v35_v3 = vld [vmem:[%s475_s1 + $0x68] sm:$0xff] }
   0x2   :  { %253 = vmatpush3.msra.mxu0 %v37_v0  ;;  %287 = vmatprep.subr.mxu1 %v331_v1  ;;  %v34_v4 = vld [vmem:[%s475_s1 + $0x60] sm:$0xff]  ;;  %v125_v5 = vld [vmem:[%s477_s3 + $0x38] sm:$0xff]  ;;  %v124_v6 = vld [vmem:[%s477_s3 + $0x30] sm:$0xff] }
   0x3   :  { %254 = vmatprep.subr.mxu0 %v331_v1  ;;  %303 = vmatprep.mubr.msk.f32.mxu1 %vm332_vm0, %v331_v1  ;;  %v33_v7 = vld [vmem:[%s475_s1 + $0x58] sm:$0xff]  ;;  %v123_v8 = vld [vmem:[%s477_s3 + $0x28] sm:$0xff] }
   0x4   :  { %255 = vmatpush3.msra.mxu0 %v36_v2  ;;  %288 = vmatpush3.msra.mxu1 %v125_v5 }
   0x5   :  { %256 = vmatprep.subr.mxu0 %v331_v1  ;;  %289 = vmatprep.subr.mxu1 %v331_v1 }
   0x6   :  { %257 = vmatpush3.msra.mxu0 %v35_v3 }
   0x7   :  { %258 = vmatprep.subr.mxu0 %v331_v1 }
   0x8   :  { %10 = vsyncpa [#allocation3], 0  ;;  %259 = vmatpush3.msra.mxu0 %v34_v4  ;;  %290 = vmatpush3.msra.mxu1 %v124_v6  ;;  %v32_v9 = vld [vmem:[%s475_s1 + $0x50] sm:$0xff]  ;;  %v122_v10 = vld [vmem:[%s477_s3 + $0x20] sm:$0xff]  ;;  %vm133_vm2 = vcmask 523264   ;;  %vm207_vm3 = vcmask 80896  }
   0x9   :  { %260 = vmatprep.subr.mxu0 %v331_v1  ;;  %291 = vmatprep.subr.mxu1 %v331_v1  ;;  %v31_v11 = vld [vmem:[%s475_s1 + $0x48] sm:$0xff]  ;;  %v121_v12 = vld [vmem:[%s477_s3 + $0x18] sm:$0xff]  ;;  %v30_v13 = vld [vmem:[%s475_s1 + $0x40] sm:$0xff] }
   0xa   :  { %261 = vmatpush3.msra.mxu0 %v33_v7  ;;  %292 = vmatpush3.msra.mxu1 %v123_v8  ;;  %v29_v14 = vld [vmem:[%s475_s1 + $0x38] sm:$0xff]  ;;  %v28_v15 = vld [vmem:[%s475_s1 + $0x30] sm:$0xff]  ;;  %v27_v16 = vld [vmem:[%s475_s1 + $0x28] sm:$0xff] }
   0xb   :  { %262 = vmatprep.subr.mxu0 %v331_v1  ;;  %293 = vmatprep.subr.mxu1 %v331_v1  ;;  %v26_v17 = vld [vmem:[%s475_s1 + $0x20] sm:$0xff]  ;;  %v25_v18 = vld [vmem:[%s475_s1 + $0x18] sm:$0xff]  ;;  %v24_v19 = vld [vmem:[%s475_s1 + $0x10] sm:$0xff] }
   0xc   :  { %263 = vmatpush3.msra.mxu0 %v32_v9  ;;  %294 = vmatpush3.msra.mxu1 %v122_v10  ;;  %v23_v20 = vld [vmem:[%s475_s1 + $0x8] sm:$0xff]  ;;  %v22_v21 = vld [vmem:[%s475_s1] sm:$0xff]  ;;  %v120_v23 = vld [vmem:[%s477_s3 + $0x10] sm:$0xff] }
   0xd   :  { %264 = vmatprep.subr.mxu0 %v331_v1  ;;  %295 = vmatprep.subr.mxu1 %v331_v1  ;;  %v21_v22 = vld [vmem:[%s474_s0] sm:$0xff]  ;;  %v119_v24 = vld [vmem:[%s477_s3 + $0x8] sm:$0xff] }
   0xe   :  { %265 = vmatpush3.msra.mxu0 %v31_v11  ;;  %296 = vmatpush3.msra.mxu1 %v121_v12  ;;  %v118_v25 = vld [vmem:[%s477_s3] sm:$0xff]  ;;  %s333_s3 = smov [#allocation2]  }
   0xf   :  { %266 = vmatprep.subr.mxu0 %v331_v1  ;;  %297 = vmatprep.subr.mxu1 %v331_v1  ;;  %v223_v26 = vld [vmem:[%s476_s2] ss:$0 sm:$0xff]  ;;  %s215_s20 = sshll.u32 %s333_s3, 4  ;;  %s216_s20 = int_to_ptr.vmem [resolvable:$true] %s215_s20 }
  0x10   :  { %267 = vmatpush3.msra.mxu0 %v30_v13  ;;  %298 = vmatpush3.msra.mxu1 %v120_v23  ;;  %v224_v32 = vld [vmem:[%s478_s4] ss:$0 sm:$0xff]  ;;  %s309_s2 = scalar_lea.vmem %s216_s20, 128  ;;  %p314_p1 = scmp.lt.s32.totalorder %s216_s20, %s216_s20 }
  0x11   :  { %268 = vmatprep.subr.mxu0 %v331_v1  ;;  %299 = vmatprep.subr.mxu1 %v331_v1  ;;  %p310_p0 = scmp.ne.s32.totalorder %s216_s20, %s309_s2  ;;  %p315_p2 = scmp.lt.s32.totalorder %s309_s2, %s309_s2 }
  0x12   :  { %269 = vmatpush3.msra.mxu0 %v29_v14  ;;  %300 = vmatpush3.msra.mxu1 %v119_v24 }
  0x13   :  { %270 = vmatprep.subr.mxu0 %v331_v1  ;;  %301 = vmatprep.subr.mxu1 %v331_v1  ;;  %p316_p3 = por %p315_p2, %p314_p1 }
  0x14   :  { %271 = vmatpush3.msra.mxu0 %v28_v15  ;;  %302 = vmatpush3.msra.mxu1 %v118_v25 }
  0x15   :  { %272 = vmatprep.subr.mxu0 %v331_v1  ;;  %p317_p4 = pnand %p316_p3, %p310_p0 }
  0x16   :  { %273 = vmatpush3.msra.mxu0 %v27_v16 }
  0x17   :  { %274 = vmatprep.subr.mxu0 %v331_v1 }
  0x18   :  { %275 = vmatpush3.msra.mxu0 %v26_v17 }
  0x19   :  { %276 = vmatprep.subr.mxu0 %v331_v1 }
  0x1a   :  { %277 = vmatpush3.msra.mxu0 %v25_v18 }
  0x1b   :  { %278 = vmatprep.subr.mxu0 %v331_v1 }
  0x1c   :  { %279 = vmatpush3.msra.mxu0 %v24_v19 }
  0x1d   :  { %280 = vmatprep.subr.mxu0 %v331_v1 }
  0x1e   :  { %281 = vmatpush3.msra.mxu0 %v23_v20 }
  0x1f   :  { %282 = vmatprep.subr.mxu0 %v331_v1 }
  0x20   :  { %283 = vmatpush3.msra.mxu0 %v22_v21 }
  0x21   :  { %285 = vmatmul.mubr.f32.vlgmr.msra.gmra.mxu0 %v21_v22 }
  0xe1   :  { %v111_v27 = vpop.f32.mrf.mxu0 }
  0xe2   :  { %v112_v28 = vadd.f32 %v223_v26, %v111_v27 }
  0xe3   :  { %v286_v29 = vpop.f32.mrf.mxu0 }
  0xe4   :  { %vm115_vm1 = vcmp.gt.f32.partialorder %v112_v28, 0.0  ;;  %v116_v30 = vmul.f32 0.01, %v112_v28 }
  0xe6   :  { %v117_v31 = vsel %vm115_vm1, %v112_v28, %v116_v30 }
  0xe7   :  { %304 = vmatmul.mubr.msk.f32.vlgmr.msra.gmra.mxu1 %vm133_vm2, %v117_v31 }
 0x1a7   :  { %v203_v33 = vpop.f32.mrf.mxu1 }
 0x1a8   :  { %v204_v34 = vadd.f32 %v224_v32, %v203_v33 }
 0x1a9   :  { %v305_v35 = vpop.f32.mrf.mxu1 }
 0x1aa   :  { %208 = vst.msk [vmem:[#allocation2] sm:$0xff] %vm207_vm3, %v204_v34 }
 0x1ab   :  { %320 = shalt.err (!%p317_p4)
}
 0x1ac   :  { %218 = dma.vmem_to_hbm [thread:$0]  %s216_s20, 128, %s479_s5, [#allocation3]  }
 0x1ad   :  { %329 = dma.done.wait [#allocation3], 128  }
 0x1ae   :  { %330 = vsyncadd [#allocation3], 4294967168 }
 0x1af   :  { %222 = vsyncpa [#allocation3], 1 }

</bundles_post_ra>
